<compile_context>
chip_gen: v7x
topology: tpu7x:2x2x1
jax: 0.10.0
libtpu: 0.0.40
codegen_flags: <defaults>
</compile_context>

<pallas_src>
import functools
import math

import jax
import jax.numpy as jnp
from jax.experimental import pallas as pl
from jax.experimental.pallas import tpu as pltpu


def _loss_kernel(preds_ref, target_ref, out_ref, acc_ref, *,
                 smoothing, arc_w, margin, scale, batch, tile_rows):
    i = pl.program_id(0)
    n = pl.num_programs(0)

    @pl.when(i == 0)
    def _init():
        acc_ref[0] = jnp.float32(0.0)

    preds = preds_ref[...].astype(jnp.float32)          # (TB, C) upcast per tile
    tgt = target_ref[...]                               # (TB, 1) int32
    TB, C = preds.shape

    confidence = 1.0 - smoothing
    smooth_value = smoothing / (C - 1)

    # Single bool target mask, reused for both per-row gathers.
    cls_ids = jax.lax.broadcasted_iota(jnp.int32, (TB, C), 1)
    tgt_mask = cls_ids == tgt                           # (TB, C) bool

    # Valid-row mask for padded tail rows; mean uses the global batch size.
    row_ids = jax.lax.broadcasted_iota(jnp.int32, (TB, 1), 0) + i * tile_rows
    row_valid = (row_ids < batch).astype(jnp.float32)   # (TB, 1)

    def gather_tgt(x):                                   # (TB, C) -> (TB, 1)
        return jnp.sum(jnp.where(tgt_mask, x, 0.0), axis=-1, keepdims=True)

    # ---- plain label-smoothed CE (algebraic form; no (TB,C) smoothed targets) ----
    m_row = jnp.max(preds, axis=-1, keepdims=True)
    shifted = preds - m_row
    lse = jnp.log(jnp.sum(jnp.exp(shifted), axis=-1, keepdims=True))
    tgt_shift = gather_tgt(shifted)
    sum_shift = jnp.sum(shifted, axis=-1, keepdims=True)
    ce = lse - ((confidence - smooth_value) * tgt_shift + smooth_value * sum_shift)

    # ---- ArcFace branch: logits = scale*cos_t, except scale*cos(theta+m) at target ----
    eps = 1e-7
    cos_t = jnp.clip(preds, -1.0 + eps, 1.0 - eps)       # (TB, C) (needed full-width)
    cos_tgt = gather_tgt(cos_t)                          # (TB, 1)
    sin_tgt = jnp.sqrt(jnp.clip(1.0 - cos_tgt * cos_tgt, 0.0, 1.0))   # per-row only
    cos_m = jnp.float32(math.cos(margin))
    sin_m = jnp.float32(math.sin(margin))
    cos_tm = cos_tgt * cos_m - sin_tgt * sin_m           # (TB, 1)

    # One full-width exp; correct the row sum only in the target column.
    max_cos = jnp.max(cos_t, axis=-1, keepdims=True)
    shift_a = scale * jnp.maximum(max_cos, cos_tm)       # stable shift for both terms
    exp_base = jnp.exp(scale * cos_t - shift_a)          # single (TB, C) exp
    sum_base = jnp.sum(exp_base, axis=-1, keepdims=True)
    exp_tgt_old = jnp.exp(scale * cos_tgt - shift_a)
    exp_tgt_new = jnp.exp(scale * cos_tm - shift_a)
    lse_arc = jnp.log(sum_base - exp_tgt_old + exp_tgt_new)

    # Algebraic smoothed-CE terms on the (shifted) arc logits, without materializing them.
    sum_shift_arc = (scale * jnp.sum(cos_t, axis=-1, keepdims=True)
                     - C * shift_a - scale * cos_tgt + scale * cos_tm)
    tgt_shift_arc = scale * cos_tm - shift_a
    arc_ce = lse_arc - ((confidence - smooth_value) * tgt_shift_arc
                        + smooth_value * sum_shift_arc)

    total = (ce + arc_w * arc_ce) * row_valid            # (TB, 1)
    acc_ref[0] += jnp.sum(total)

    @pl.when(i == n - 1)
    def _finalize():
        out_ref[0, 0] = acc_ref[0] / jnp.float32(batch)


def label_smoothing_ce_with_arcface(preds, target, *, label_smoothing=0.1,
                                    arc_face_weights=0.1, margin=0.5, scale=30.0,
                                    max_tile_bytes=2 << 20):
    """preds: (B, C) float logits / cosine sims (any float dtype); target: (B,) ints."""
    B, C = preds.shape
    bytes_per = jnp.dtype(preds.dtype).itemsize

    # Rows per tile: multiple of 8 sublanes, capped so 2 double-buffered input tiles
    # stay far below default scoped VMEM on every generation (v5e 16 MiB .. v7x 32 MiB).
    tb = max(8, (max_tile_bytes // max(1, C * bytes_per)) // 8 * 8)
    b_pad = ((B + 7) // 8) * 8
    tb = min(tb, b_pad)
    b_pad = ((b_pad + tb - 1) // tb) * tb
    num_tiles = b_pad // tb

    if b_pad != B:
        preds = jnp.pad(preds, ((0, b_pad - B), (0, 0)))
        target = jnp.pad(target, (0, b_pad - B))
    target_2d = target.reshape(b_pad, 1).astype(jnp.int32)

    kernel = functools.partial(
        _loss_kernel,
        smoothing=float(label_smoothing),
        arc_w=float(arc_face_weights),
        margin=float(margin),
        scale=float(scale),
        batch=B,
        tile_rows=tb,
    )

    out = pl.pallas_call(
        kernel,
        out_shape=jax.ShapeDtypeStruct((1, 1), jnp.float32),
        grid_spec=pltpu.PrefetchScalarGridSpec(
            num_scalar_prefetch=0,
            grid=(num_tiles,),
            in_specs=[
                pl.BlockSpec((tb, C), lambda i: (i, 0)),   # preds tile (native dtype)
                pl.BlockSpec((tb, 1), lambda i: (i, 0)),   # target tile
            ],
            out_specs=pl.BlockSpec(memory_space=pltpu.MemorySpace.SMEM),
            scratch_shapes=[pltpu.SMEM((1,), jnp.float32)],
        ),
        compiler_params=pltpu.CompilerParams(
            dimension_semantics=("arbitrary",),            # serial reduction axis
        ),
    )(preds, target_2d)
    return out[0, 0]


def _reference(preds, target, *, label_smoothing=0.1, arc_face_weights=0.1,
               margin=0.5, scale=30.0):
    """Pure-JAX reference for validation."""
    B, C = preds.shape
    preds = preds.astype(jnp.float32)
    confidence = 1.0 - label_smoothing
    smooth_value = label_smoothing / (C - 1)
    onehot = jax.nn.one_hot(target, C, dtype=jnp.float32)
    smoothed = onehot * confidence + (1.0 - onehot) * smooth_value

    def ls_ce(logits):
        logp = jax.nn.log_softmax(logits, axis=-1)
        return jnp.mean(jnp.sum(-smoothed * logp, axis=-1))

    ce = ls_ce(preds)
    eps = 1e-7
    cos_t = jnp.clip(preds, -1.0 + eps, 1.0 - eps)
    sin_t = jnp.sqrt(jnp.clip(1.0 - cos_t * cos_t, 0.0, 1.0))
    cos_tm = cos_t * jnp.cos(margin) - sin_t * jnp.sin(margin)
    arc_logits = scale * jnp.where(onehot > 0.0, cos_tm, cos_t)
    return ce + arc_face_weights * ls_ce(arc_logits)


if __name__ == "__main__":
    key = jax.random.PRNGKey(0)

    # Case 1: lane-aligned small batch.
    kp, kt = jax.random.split(key)
    B, C = 8, 128
    preds = jnp.tanh(jax.random.normal(kp, (B, C), dtype=jnp.float32))
    target = jax.random.randint(kt, (B,), 0, C, dtype=jnp.int32)

    loss = jax.block_until_ready(label_smoothing_ce_with_arcface(preds, target))
    ref = _reference(preds, target)
    assert jnp.allclose(loss, ref, rtol=1e-4, atol=1e-5), (loss, ref)

    # Case 2: ragged batch (exercises padded-row masking in the tail tile).
    kp2, kt2 = jax.random.split(jax.random.PRNGKey(1))
    B2, C2 = 12, 128
    preds2 = jnp.tanh(jax.random.normal(kp2, (B2, C2), dtype=jnp.float32))
    target2 = jax.random.randint(kt2, (B2,), 0, C2, dtype=jnp.int32)

    loss2 = jax.block_until_ready(label_smoothing_ce_with_arcface(preds2, target2))
    ref2 = _reference(preds2, target2)
    assert jnp.allclose(loss2, ref2, rtol=1e-4, atol=1e-5), (loss2, ref2)

    print("KERNEL_OK")
</pallas_src>

<mosaic_0001>
module attributes {stable_mosaic.version = 11 : i64} {
  func.func @_loss_kernel(%arg0: i32, %arg1: memref<8x128xf32, #tpu.memory_space<vmem>>, %arg2: memref<8x1xi32, #tpu.memory_space<vmem>>, %arg3: memref<1x1xf32, #tpu.memory_space<smem>>, %arg4: memref<1xf32, #tpu.memory_space<smem>>) attributes {dimension_semantics = [#tpu.dimension_semantics<arbitrary>], iteration_bounds = array<i64: 1>, scalar_prefetch = 0 : i64, scratch_operands = 1 : i64, tpu.core_type = #tpu.core_type<tc>, window_params = [{transform_indices = @transform_0, window_bounds = array<i64: 8, 128>}, {transform_indices = @transform_1, window_bounds = array<i64: 8, 1>}, {transform_indices = @transform_2, window_bounds = array<i64: 1, 1>}]} {
    %c0_i32 = arith.constant 0 : i32
    %0 = arith.cmpi eq, %arg0, %c0_i32 : i32
    %1 = arith.extui %0 : i1 to i32
    %c0_i32_0 = arith.constant 0 : i32
    %2 = arith.cmpi ne, %1, %c0_i32_0 : i32
    scf.if %2 {
      %cst_40 = arith.constant 0.000000e+00 : f32
      %c0_41 = arith.constant 0 : index
      %116 = memref.load %arg4[%c0_41] : memref<1xf32, #tpu.memory_space<smem>>
      memref.store %cst_40, %arg4[%c0_41] : memref<1xf32, #tpu.memory_space<smem>>
    } else {
    }
    %c0 = arith.constant 0 : index
    %c0_1 = arith.constant 0 : index
    %3 = vector.load %arg1[%c0, %c0_1] : memref<8x128xf32, #tpu.memory_space<vmem>>, vector<8x128xf32>
    %c0_2 = arith.constant 0 : index
    %c0_3 = arith.constant 0 : index
    %4 = vector.load %arg2[%c0_2, %c0_3] : memref<8x1xi32, #tpu.memory_space<vmem>>, vector<8x1xi32>
    %5 = tpu.iota {dimensions = array<i32: 1>} : vector<8x128xi32>
    %6 = vector.broadcast %4 : vector<8x1xi32> to vector<8x128xi32>
    %7 = arith.cmpi eq, %5, %6 : vector<8x128xi32>
    %8 = tpu.iota {dimensions = array<i32: 0>} : vector<8x1xi32>
    %c8_i32 = arith.constant 8 : i32
    %9 = arith.muli %arg0, %c8_i32 : i32
    %10 = vector.broadcast %9 : i32 to vector<8x1xi32>
    %11 = arith.addi %8, %10 : vector<8x1xi32>
    %c8_i32_4 = arith.constant 8 : i32
    %12 = vector.broadcast %c8_i32_4 : i32 to vector<8x1xi32>
    %13 = arith.cmpi slt, %11, %12 : vector<8x1xi32>
    %14 = arith.extui %13 : vector<8x1xi1> to vector<8x1xi32>
    %15 = arith.sitofp %14 : vector<8x1xi32> to vector<8x1xf32>
    %cst = arith.constant dense<0xFF800000> : vector<8xf32>
    %16 = vector.multi_reduction <maximumf>, %3, %cst [1] : vector<8x128xf32> to vector<8xf32>
    %17 = vector.shape_cast %16 : vector<8xf32> to vector<8x1xf32>
    %18 = vector.broadcast %17 : vector<8x1xf32> to vector<8x128xf32>
    %19 = arith.subf %3, %18 : vector<8x128xf32>
    %20 = math.exp %19 : vector<8x128xf32>
    %cst_5 = arith.constant dense<0.000000e+00> : vector<8xf32>
    %21 = vector.multi_reduction <add>, %20, %cst_5 [1] : vector<8x128xf32> to vector<8xf32>
    %22 = vector.shape_cast %21 : vector<8xf32> to vector<8x1xf32>
    %23 = math.log %22 : vector<8x1xf32>
    %cst_6 = arith.constant 0.000000e+00 : f32
    %24 = vector.broadcast %cst_6 : f32 to vector<8x128xf32>
    %25 = arith.select %7, %19, %24 : vector<8x128xi1>, vector<8x128xf32>
    %cst_7 = arith.constant dense<0.000000e+00> : vector<8xf32>
    %26 = vector.multi_reduction <add>, %25, %cst_7 [1] : vector<8x128xf32> to vector<8xf32>
    %27 = vector.shape_cast %26 : vector<8xf32> to vector<8x1xf32>
    %cst_8 = arith.constant dense<0.000000e+00> : vector<8xf32>
    %28 = vector.multi_reduction <add>, %19, %cst_8 [1] : vector<8x128xf32> to vector<8xf32>
    %29 = vector.shape_cast %28 : vector<8xf32> to vector<8x1xf32>
    %cst_9 = arith.constant 0.899212599 : f32
    %30 = vector.broadcast %cst_9 : f32 to vector<8x1xf32>
    %31 = arith.mulf %30, %27 : vector<8x1xf32>
    %cst_10 = arith.constant 7.87401571E-4 : f32
    %32 = vector.broadcast %cst_10 : f32 to vector<8x1xf32>
    %33 = arith.mulf %32, %29 : vector<8x1xf32>
    %34 = arith.addf %31, %33 : vector<8x1xf32>
    %35 = arith.subf %23, %34 : vector<8x1xf32>
    %cst_11 = arith.constant -0.99999988 : f32
    %cst_12 = arith.constant 0.99999988 : f32
    %36 = vector.broadcast %cst_11 : f32 to vector<8x128xf32>
    %37 = arith.maximumf %36, %3 : vector<8x128xf32>
    %38 = vector.broadcast %cst_12 : f32 to vector<8x128xf32>
    %39 = arith.minimumf %38, %37 : vector<8x128xf32>
    %cst_13 = arith.constant 0.000000e+00 : f32
    %40 = vector.broadcast %cst_13 : f32 to vector<8x128xf32>
    %41 = arith.select %7, %39, %40 : vector<8x128xi1>, vector<8x128xf32>
    %cst_14 = arith.constant dense<0.000000e+00> : vector<8xf32>
    %42 = vector.multi_reduction <add>, %41, %cst_14 [1] : vector<8x128xf32> to vector<8xf32>
    %43 = vector.shape_cast %42 : vector<8xf32> to vector<8x1xf32>
    %44 = arith.mulf %43, %43 : vector<8x1xf32>
    %cst_15 = arith.constant 1.000000e+00 : f32
    %45 = vector.broadcast %cst_15 : f32 to vector<8x1xf32>
    %46 = arith.subf %45, %44 : vector<8x1xf32>
    %cst_16 = arith.constant 0.000000e+00 : f32
    %cst_17 = arith.constant 1.000000e+00 : f32
    %47 = vector.broadcast %cst_16 : f32 to vector<8x1xf32>
    %48 = arith.maximumf %47, %46 : vector<8x1xf32>
    %49 = vector.broadcast %cst_17 : f32 to vector<8x1xf32>
    %50 = arith.minimumf %49, %48 : vector<8x1xf32>
    %51 = math.sqrt %50 : vector<8x1xf32>
    %cst_18 = arith.constant 0.87758255 : f32
    %52 = vector.broadcast %cst_18 : f32 to vector<8x1xf32>
    %53 = arith.mulf %43, %52 : vector<8x1xf32>
    %cst_19 = arith.constant 0.47942555 : f32
    %54 = vector.broadcast %cst_19 : f32 to vector<8x1xf32>
    %55 = arith.mulf %51, %54 : vector<8x1xf32>
    %56 = arith.subf %53, %55 : vector<8x1xf32>
    %cst_20 = arith.constant dense<0xFF800000> : vector<8xf32>
    %57 = vector.multi_reduction <maximumf>, %39, %cst_20 [1] : vector<8x128xf32> to vector<8xf32>
    %58 = vector.shape_cast %57 : vector<8xf32> to vector<8x1xf32>
    %59 = arith.maximumf %58, %56 : vector<8x1xf32>
    %cst_21 = arith.constant 3.000000e+01 : f32
    %60 = vector.broadcast %cst_21 : f32 to vector<8x1xf32>
    %61 = arith.mulf %60, %59 : vector<8x1xf32>
    %cst_22 = arith.constant 3.000000e+01 : f32
    %62 = vector.broadcast %cst_22 : f32 to vector<8x128xf32>
    %63 = arith.mulf %62, %39 : vector<8x128xf32>
    %64 = vector.broadcast %61 : vector<8x1xf32> to vector<8x128xf32>
    %65 = arith.subf %63, %64 : vector<8x128xf32>
    %66 = math.exp %65 : vector<8x128xf32>
    %cst_23 = arith.constant dense<0.000000e+00> : vector<8xf32>
    %67 = vector.multi_reduction <add>, %66, %cst_23 [1] : vector<8x128xf32> to vector<8xf32>
    %68 = vector.shape_cast %67 : vector<8xf32> to vector<8x1xf32>
    %cst_24 = arith.constant 3.000000e+01 : f32
    %69 = vector.broadcast %cst_24 : f32 to vector<8x1xf32>
    %70 = arith.mulf %69, %43 : vector<8x1xf32>
    %71 = arith.subf %70, %61 : vector<8x1xf32>
    %72 = math.exp %71 : vector<8x1xf32>
    %cst_25 = arith.constant 3.000000e+01 : f32
    %73 = vector.broadcast %cst_25 : f32 to vector<8x1xf32>
    %74 = arith.mulf %73, %56 : vector<8x1xf32>
    %75 = arith.subf %74, %61 : vector<8x1xf32>
    %76 = math.exp %75 : vector<8x1xf32>
    %77 = arith.subf %68, %72 : vector<8x1xf32>
    %78 = arith.addf %77, %76 : vector<8x1xf32>
    %79 = math.log %78 : vector<8x1xf32>
    %cst_26 = arith.constant dense<0.000000e+00> : vector<8xf32>
    %80 = vector.multi_reduction <add>, %39, %cst_26 [1] : vector<8x128xf32> to vector<8xf32>
    %81 = vector.shape_cast %80 : vector<8xf32> to vector<8x1xf32>
    %cst_27 = arith.constant 3.000000e+01 : f32
    %82 = vector.broadcast %cst_27 : f32 to vector<8x1xf32>
    %83 = arith.mulf %82, %81 : vector<8x1xf32>
    %cst_28 = arith.constant 1.280000e+02 : f32
    %84 = vector.broadcast %cst_28 : f32 to vector<8x1xf32>
    %85 = arith.mulf %84, %61 : vector<8x1xf32>
    %86 = arith.subf %83, %85 : vector<8x1xf32>
    %cst_29 = arith.constant 3.000000e+01 : f32
    %87 = vector.broadcast %cst_29 : f32 to vector<8x1xf32>
    %88 = arith.mulf %87, %43 : vector<8x1xf32>
    %89 = arith.subf %86, %88 : vector<8x1xf32>
    %cst_30 = arith.constant 3.000000e+01 : f32
    %90 = vector.broadcast %cst_30 : f32 to vector<8x1xf32>
    %91 = arith.mulf %90, %56 : vector<8x1xf32>
    %92 = arith.addf %89, %91 : vector<8x1xf32>
    %cst_31 = arith.constant 3.000000e+01 : f32
    %93 = vector.broadcast %cst_31 : f32 to vector<8x1xf32>
    %94 = arith.mulf %93, %56 : vector<8x1xf32>
    %95 = arith.subf %94, %61 : vector<8x1xf32>
    %cst_32 = arith.constant 0.899212599 : f32
    %96 = vector.broadcast %cst_32 : f32 to vector<8x1xf32>
    %97 = arith.mulf %96, %95 : vector<8x1xf32>
    %cst_33 = arith.constant 7.87401571E-4 : f32
    %98 = vector.broadcast %cst_33 : f32 to vector<8x1xf32>
    %99 = arith.mulf %98, %92 : vector<8x1xf32>
    %100 = arith.addf %97, %99 : vector<8x1xf32>
    %101 = arith.subf %79, %100 : vector<8x1xf32>
    %cst_34 = arith.constant 1.000000e-01 : f32
    %102 = vector.broadcast %cst_34 : f32 to vector<8x1xf32>
    %103 = arith.mulf %102, %101 : vector<8x1xf32>
    %104 = arith.addf %35, %103 : vector<8x1xf32>
    %105 = arith.mulf %104, %15 : vector<8x1xf32>
    %c0_35 = arith.constant 0 : index
    %106 = memref.load %arg4[%c0_35] : memref<1xf32, #tpu.memory_space<smem>>
    %107 = vector.shape_cast %105 : vector<8x1xf32> to vector<1x8x1xf32>
    %cst_36 = arith.constant dense<0.000000e+00> : vector<1xf32>
    %108 = vector.multi_reduction <add>, %107, %cst_36 [1, 2] : vector<1x8x1xf32> to vector<1xf32>
    %109 = vector.shape_cast %108 : vector<1xf32> to vector<1x1x1xf32>
    %110 = vector.extract %109[0, 0, 0] : f32 from vector<1x1x1xf32>
    %111 = arith.addf %106, %110 : f32
    %c0_37 = arith.constant 0 : index
    %112 = memref.load %arg4[%c0_37] : memref<1xf32, #tpu.memory_space<smem>>
    memref.store %111, %arg4[%c0_37] : memref<1xf32, #tpu.memory_space<smem>>
    %c0_i32_38 = arith.constant 0 : i32
    %113 = arith.cmpi eq, %arg0, %c0_i32_38 : i32
    %114 = arith.extui %113 : i1 to i32
    %c0_i32_39 = arith.constant 0 : i32
    %115 = arith.cmpi ne, %114, %c0_i32_39 : i32
    scf.if %115 {
      %c0_40 = arith.constant 0 : index
      %116 = memref.load %arg4[%c0_40] : memref<1xf32, #tpu.memory_space<smem>>
      %cst_41 = arith.constant 8.000000e+00 : f32
      %117 = arith.divf %116, %cst_41 : f32
      %c0_42 = arith.constant 0 : index
      %c0_43 = arith.constant 0 : index
      %118 = memref.load %arg3[%c0_42, %c0_43] : memref<1x1xf32, #tpu.memory_space<smem>>
      memref.store %117, %arg3[%c0_42, %c0_43] : memref<1x1xf32, #tpu.memory_space<smem>>
    } else {
    }
    return
  }
  func.func @transform_0(%arg0: i32) -> (i32, i32) {
    %c0_i32 = arith.constant 0 : i32
    %c0_i32_0 = arith.constant 0 : i32
    return %arg0, %c0_i32 : i32, i32
  }
  func.func @transform_1(%arg0: i32) -> (i32, i32) {
    %c0_i32 = arith.constant 0 : i32
    %c0_i32_0 = arith.constant 0 : i32
    return %arg0, %c0_i32 : i32, i32
  }
  func.func @transform_2(%arg0: i32) -> (i32, i32) {
    %c0_i32 = arith.constant 0 : i32
    %c0_i32_0 = arith.constant 0 : i32
    %c0_i32_1 = arith.constant 0 : i32
    return %c0_i32, %c0_i32_0 : i32, i32
  }
}

</mosaic_0001>

<bundles_post_ra>
// kernel: tpu_custom_call.1
= control target key start
LH: loop header
LB: loop body
LE: loop exit
PB: predicated region body
PF: predicated region fallthrough
CT: control target
= control target key end

     0   :  { %s213_s0 = inlined_call_operand.vmem [shape: f32[8,128], index: 0, kind: input, shape index: {}]   ;;  %s214_s1 = inlined_call_operand.vmem [shape: s32[8,1], index: 1, kind: input, shape index: {}]   ;;  %s215_s2 = inlined_call_operand.hbm [shape: f32[1,1], index: 2, kind: output, shape index: {}]  }
   0x1   :  { %v19_v0 = vld [vmem:[%s214_s1] sm:$0xff] }
   0x2   :  { %v18_v1 = vld [vmem:[%s213_s0] sm:$0xff] }
   0x3   :  { %7 = vsyncpa [#allocation4], 0  ;;  %v176_v2 = vmov 0   ;;  %v144_v3 = vclamps-f32 %v18_v1, 0.9999999  ;;  %v20_v4 = vlaneseq  ;;  %vm108_vm3 = vcmask 7168  }
   0x4   :  { %149 = vset.pattern.permute.xlu0 %v176_v2  ;;  %s164_s15 = scalar_lea.hbm %s215_s2, 16 }
   0x5   :  { %23 = vperm.xlu0 %149, %v19_v0   ;;  %71 = vmax.xlane.f32.xlu1 %v144_v3  ;;  %v21_v5 = vand.u32 127, %v20_v4  ;;  %v75_v23 = vmul.f32 30.0, %v144_v3  ;;  %p165_p0 = scmp.ne.s32.totalorder %s215_s2, %s164_s15  ;;  %p168_p1 = scmp.lt.u32.totalorder %s164_s15, %s215_s2 }
   0x7   :  { %p170_p2 = pnand %p168_p1, %p165_p0 }
   0x9   :  { %34 = vmax.xlane.f32.xlu1 %v18_v1 }
  0x84   :  { %v24_v6 = vpop.permute.xlu0 %23 }
  0x85   :  { %vm25_vm0 = vcmp.eq.s32.totalorder %v21_v5, %v24_v6 }
  0x86   :  { %v54_v7 = vsel %vm25_vm0, %v144_v3, 0.0 }
  0x87   :  { %55 = vadd.xlane.f32.xlu0 %v54_v7 }
  0x92   :  { %v72_v21 = vpop.xlane.xlu1 %71 }
  0x96   :  { %v35_v31 = vpop.xlane.xlu1 %34 }
  0x97   :  { %v36_v32 = vsub.f32 %v18_v1, %v35_v31 }
  0x99   :  { %v37_v33 = vmul.f32 1.442695, %v36_v32  ;;  %v43_v36 = vsel %vm25_vm0, %v36_v32, 0.0 }
 0x114   :  { %v56_v8 = vpop.xlane.xlu0 %55 }
 0x115   :  { %v57_v9 = vmul.f32 %v56_v8, %v56_v8  ;;  %v68_v18 = vmul.f32 0.87758255, %v56_v8  ;;  %v81_v25 = vmul.f32 30.0, %v56_v8 }
 0x117   :  { %v58_v10 = vsub.f32 1.0, %v57_v9 }
 0x119   :  { %v59_v11 = vmax.f32 %v58_v10, 0.0 }
 0x11b   :  { %v60_v12 = vmin.f32 %v59_v11, 1.0 }
 0x11d   :  { %150 = vrsqrt.f32 %v60_v12  ;;  %vm63_vm1 = vcmp.eq.f32.partialorder %v60_v12, inf  ;;  %v66_v15 = vand.u32 2147483648, %v60_v12  ;;  %vm65_vm2 = vcmp.eq.f32.partialorder %v60_v12, 0.0 }
 0x127   :  { %v151_v13 = vpop.eup %150 }
 0x128   :  { %v62_v14 = vmul.f32 %v151_v13, %v60_v12 }
 0x12a   :  { %v64_v16 = vsel %vm63_vm1, %v60_v12, %v62_v14 }
 0x12b   :  { %v67_v17 = vsel %vm65_vm2, %v66_v15, %v64_v16 }
 0x12c   :  { %v69_v19 = vmul.f32 0.47942555, %v67_v17 }
 0x12e   :  { %v70_v20 = vsub.f32 %v68_v18, %v69_v19 }
 0x130   :  { %v73_v22 = vmax.f32 %v72_v21, %v70_v20  ;;  %v85_v26 = vmul.f32 30.0, %v70_v20 }
 0x132   :  { %v74_v24 = vmul.f32 30.0, %v73_v22 }
 0x134   :  { %v82_v27 = vsub.f32 %v81_v25, %v74_v24  ;;  %v86_v28 = vsub.f32 %v85_v26, %v74_v24  ;;  %v76_v29 = vsub.f32 %v75_v23, %v74_v24  ;;  %v96_v45 = vmul.f32 128.0, %v74_v24 }
 0x136   :  { %v77_v30 = vmul.f32 1.442695, %v76_v29  ;;  %v83_v37 = vmul.f32 1.442695, %v82_v27  ;;  %v87_v38 = vmul.f32 1.442695, %v86_v28 }
 0x137   :  { %v100_v53 = vmul.f32 0.8992126, %v86_v28 }
 0x138   :  { %152 = vpow2.f32 %v77_v30 }
 0x139   :  { %154 = vpow2.f32 %v37_v33 }
 0x13a   :  { %156 = vpow2.f32 %v83_v37 }
 0x13b   :  { %158 = vpow2.f32 %v87_v38 }
 0x142   :  { %v153_v34 = vpop.eup %152 }
 0x143   :  { %79 = vadd.xlane.f32.xlu1 %v153_v34  ;;  %v155_v35 = vpop.eup %154 }
 0x144   :  { %v157_v39 = vpop.eup %156 }
 0x145   :  { %v159_v42 = vpop.eup %158 }
 0x147   :  { %93 = vadd.xlane.f32.xlu1 %v144_v3 }
 0x14b   :  { %39 = vadd.xlane.f32.xlu1 %v155_v35 }
 0x14f   :  { %44 = vadd.xlane.f32.xlu1 %v43_v36 }
 0x153   :  { %46 = vadd.xlane.f32.xlu1 %v36_v32 }
 0x1d0   :  { %v80_v40 = vpop.xlane.xlu1 %79 }
 0x1d1   :  { %v89_v41 = vsub.f32 %v80_v40, %v157_v39 }
 0x1d3   :  { %v90_v43 = vadd.f32 %v159_v42, %v89_v41 }
 0x1d4   :  { %v94_v44 = vpop.xlane.xlu1 %93 }
 0x1d5   :  { %160 = vlog2.f32 %v90_v43  ;;  %v95_v46 = vmul.f32 30.0, %v94_v44 }
 0x1d7   :  { %v97_v47 = vsub.f32 %v95_v46, %v96_v45 }
 0x1d8   :  { %v40_v48 = vpop.xlane.xlu1 %39 }
 0x1d9   :  { %v98_v49 = vsub.f32 %v97_v47, %v81_v25  ;;  %162 = vlog2.f32 %v40_v48 }
 0x1db   :  { %v99_v50 = vadd.f32 %v98_v49, %v85_v26 }
 0x1dc   :  { %v45_v51 = vpop.xlane.xlu1 %44 }
 0x1dd   :  { %v101_v52 = vmul.f32 0.0007874016, %v99_v50  ;;  %v48_v58 = vmul.f32 0.8992126, %v45_v51 }
 0x1df   :  { %v161_v54 = vpop.eup %160  ;;  %v102_v55 = vadd.f32 %v101_v52, %v100_v53 }
 0x1e0   :  { %v92_v56 = vmul.f32 0.6931472, %v161_v54  ;;  %v47_v57 = vpop.xlane.xlu1 %46 }
 0x1e1   :  { %v49_v59 = vmul.f32 0.0007874016, %v47_v57 }
 0x1e2   :  { %v103_v60 = vsub.f32 %v92_v56, %v102_v55 }
 0x1e3   :  { %v163_v61 = vpop.eup %162  ;;  %v50_v62 = vadd.f32 %v49_v59, %v48_v58 }
 0x1e4   :  { %v42_v63 = vmul.f32 0.6931472, %v163_v61  ;;  %v104_v1 = vmul.f32 0.1, %v103_v60 }
 0x1e6   :  { %v51_v0 = vsub.f32 %v42_v63, %v50_v62 }
 0x1e8   :  { %v105_v2 = vadd.f32 %v104_v1, %v51_v0 }
 0x1ea   :  { %v109_v3 = vsel %vm108_vm3, %v105_v2, 0.0 }
 0x1eb   :  { %110 = vadd.xlane.f32.xlu1 %v109_v3 }
 0x278   :  { %v111_v4 = vpop.xlane.xlu1 %110 }
 0x279   :  { %v112_v5 = vrot.slane %v111_v4, 4 }
 0x27b   :  { %v113_v6 = vadd.f32 %v112_v5, %v111_v4 }
 0x27d   :  { %v114_v7 = vrot.slane %v113_v6, 2 }
 0x27f   :  { %v115_v8 = vadd.f32 %v114_v7, %v113_v6 }
 0x281   :  { %v116_v9 = vrot.slane %v115_v8, 1 }
 0x283   :  { %v117_v10 = vadd.f32 %v116_v9, %v115_v8 }
 0x285   :  { %145 = vpush %v117_v10 }
 0x2b6   :  { %s146_s0 = spop %145 }
 0x2b7   :  { %s128_s1 = smul.f32 0.125, %s146_s0 }
 0x2b9   :  { %130 = sst [smem:[#allocation3]] %s128_s1 }
 0x2ba   :  { %173 = shalt.err (!%p170_p2)
}
 0x2bb   :  { %s177_s20 = smov [#allocation3]  }
 0x2bc   :  { %138 = dma.smem_to_hbm %s177_s20, 16, %s215_s2, [#allocation4]  }
 0x2bd   :  { %174 = dma.done.wait [#allocation4], 16  }
 0x2be   :  { %175 = vsyncadd [#allocation4], 4294967280 }
 0x2bf   :  { %142 = sfence }
 0x2c0   :  { %143 = vsyncpa [#allocation4], 1 }

</bundles_post_ra>
